<compile_context>
chip_gen: v7x
topology: tpu7x:2x2x1
jax: 0.10.0
libtpu: 0.0.40
codegen_flags: <defaults>
</compile_context>

<pallas_src>
import collections
import functools

import jax
import jax.numpy as jnp
from jax.experimental import pallas as pl
from jax.experimental.pallas import tpu as pltpu


# ----------------------------------------------------------------------------
# Device-generation helpers (bf16 default + K alignment on v6e/v7x)
# ----------------------------------------------------------------------------
def _tpu_generation() -> int:
    try:
        kind = jax.devices()[0].device_kind.lower()
    except Exception:
        return 0
    for g in (7, 6, 5, 4, 3, 2):
        if f"v{g}" in kind:
            return g
    return 0


def _default_compute_dtype():
    # bf16 operands halve HBM traffic on the mem-bound path; v6e/v7x VPU/MXU
    # handle bf16 natively.  f32 elsewhere (and always f32 MXU accumulation).
    return jnp.bfloat16 if _tpu_generation() >= 6 else jnp.float32


_K_ALIGN = 256 if _tpu_generation() >= 6 else 128   # MXU K-pass / lane alignment


# ----------------------------------------------------------------------------
# Bilinear interpolation matrix (align_corners=True), cached per (out, in).
# ----------------------------------------------------------------------------
@functools.lru_cache(maxsize=32)
def _interp_matrix(out_size: int, in_size: int) -> jnp.ndarray:
    """Row-stochastic bilinear interpolation matrix, align_corners=True."""
    if out_size == 1:
        src = jnp.zeros((1,), jnp.float32)
    else:
        scale = (in_size - 1) / (out_size - 1)
        src = jnp.arange(out_size, dtype=jnp.float32) * scale
    lo = jnp.clip(jnp.floor(src).astype(jnp.int32), 0, in_size - 1)
    hi = jnp.minimum(lo + 1, in_size - 1)
    w_hi = src - lo.astype(jnp.float32)
    w_lo = 1.0 - w_hi
    rows = jnp.arange(out_size)
    m = jnp.zeros((out_size, in_size), jnp.float32)
    m = m.at[rows, lo].add(w_lo)
    m = m.at[rows, hi].add(w_hi)
    return m


# ----------------------------------------------------------------------------
# Fused kernel: (preprocess-folded) matmul -> L2-normalize
# ----------------------------------------------------------------------------
def _fused_embed_kernel(x_ref, w_ref, b_ref, o_ref, *, return_logits, eps,
                        norm_chunk):
    # x_ref: (tn, K) compute dtype; w_ref: (K, D) compute dtype;
    # b_ref: (1, D) f32; o_ref: (tn, D) f32.  Full-K MXU matmul, f32 accum.
    y = jnp.dot(x_ref[...], w_ref[...],
                preferred_element_type=jnp.float32) + b_ref[...]
    if return_logits:
        o_ref[...] = y.astype(o_ref.dtype)
        return
    tn = y.shape[0]
    if tn <= norm_chunk:
        # rsqrt lowers to the EUP slot; eps avoids NaN for all-zero rows
        # (documented divergence from the eps-free reference, ~1e-12).
        inv = jax.lax.rsqrt(jnp.sum(y * y, axis=1, keepdims=True) + eps)
        o_ref[...] = (y * inv).astype(o_ref.dtype)
    else:
        # Chunk the epilogue so y, y*y and y*inv never hold >~32 vregs live.
        for r0 in range(0, tn, norm_chunk):
            yc = y[r0:r0 + norm_chunk]
            inv = jax.lax.rsqrt(jnp.sum(yc * yc, axis=1, keepdims=True) + eps)
            o_ref[r0:r0 + norm_chunk, :] = (yc * inv).astype(o_ref.dtype)


def fused_embed_l2norm(x_flat, w, b, *, return_logits=False, eps=1e-12,
                       max_tile_n=None, norm_chunk=256):
    """x_flat: (N, K), w: (K, D), b: (1, D) -> (N, D) f32 (L2-normalized unless
    return_logits).  K and D must be lane-aligned (caller zero-pads K)."""
    n, k = x_flat.shape
    kw, d = w.shape
    assert k == kw and b.shape == (1, d)
    assert k % 128 == 0 and d % 128 == 0, "caller must lane-align K and D"

    # Pad N only up to one sublane (<= 7 rows) when the batch is tiny; all
    # other misalignment is handled by Pallas' masked partial edge tile.
    n_orig = n
    if n < 8:
        x_flat = jnp.pad(x_flat, ((0, 8 - n), (0, 0)))
        n = 8

    if max_tile_n is None:
        # v6e/v7x MXU is 256 wide; 512-row tiles for the mem-bound small-K path.
        max_tile_n = 512 if k <= 1024 else 256
    n8 = ((n + 7) // 8) * 8
    tn = min(max_tile_n, n8)
    # Ensure >= 2 grid steps when the batch allows so the "parallel" axis can
    # shard across both TensorCores on v7x (no-op on single-TC chips).
    if n8 >= 16 and pl.cdiv(n, tn) < 2:
        tn = (((n8 // 2) + 7) // 8) * 8
    grid_n = pl.cdiv(n, tn)

    # Scoped-VMEM budget: double-buffered x / W / b / out tiles + y headroom.
    xb = jnp.dtype(x_flat.dtype).itemsize
    wb = jnp.dtype(w.dtype).itemsize
    vmem_bytes = (2 * tn * k * xb + 2 * k * d * wb + 2 * d * 4
                  + 2 * tn * d * 4 + 2 * tn * d * 4)
    vmem_limit = min(64 * 1024 * 1024,
                     max(int(1.5 * vmem_bytes) + (2 << 20), 32 * 1024 * 1024))

    kernel = functools.partial(_fused_embed_kernel,
                               return_logits=return_logits, eps=eps,
                               norm_chunk=norm_chunk)
    out = pl.pallas_call(
        kernel,
        out_shape=jax.ShapeDtypeStruct((n, d), jnp.float32),
        grid_spec=pltpu.PrefetchScalarGridSpec(
            num_scalar_prefetch=0,
            grid=(grid_n,),
            in_specs=[
                pl.BlockSpec((tn, k), lambda i: (i, 0)),
                pl.BlockSpec((k, d), lambda i: (0, 0)),   # grid-invariant W
                pl.BlockSpec((1, d), lambda i: (0, 0)),   # grid-invariant b
            ],
            out_specs=pl.BlockSpec((tn, d), lambda i: (i, 0)),
        ),
        compiler_params=pltpu.CompilerParams(
            dimension_semantics=("parallel",),
            vmem_limit_bytes=vmem_limit),
    )(x_flat, w, b)
    return out[:n_orig] if n_orig != n else out


# ----------------------------------------------------------------------------
# BaseFaceModel forward
# ----------------------------------------------------------------------------
class BaseFaceModelPallas:
    def __init__(self, input_shape=(16, 16), embed_dim=128, mean=0.5, std=0.5,
                 in_channels=3, seed=1, compute_dtype=None, fold_factor=2.0,
                 max_cached_shapes=8):
        self.input_shape = tuple(input_shape)
        self.embed_dim = embed_dim
        self.in_channels = in_channels
        self.fold_factor = float(fold_factor)
        self.max_cached_shapes = max_cached_shapes
        self.compute_dtype = (_default_compute_dtype() if compute_dtype is None
                              else compute_dtype)
        # Scalar OR per-channel mean/std (the bias/weight fold handles both).
        self.mean_arr = jnp.broadcast_to(jnp.asarray(mean, jnp.float32),
                                         (in_channels,))
        self.std_arr = jnp.broadcast_to(jnp.asarray(std, jnp.float32),
                                        (in_channels,))

        k0 = in_channels * input_shape[0] * input_shape[1]
        kw_, kb_ = jax.random.split(jax.random.PRNGKey(seed))
        # Deterministic stand-in backbone params (backbone is None upstream).
        self.w = (jax.random.normal(kw_, (k0, embed_dim), jnp.float32)
                  / jnp.sqrt(jnp.float32(k0)))
        self.b = jax.random.normal(kb_, (1, embed_dim), jnp.float32) * 0.01

        # Fold the (x - mean)/std shift into the bias once; the interpolation
        # matrices are row-stochastic, so this is input-shape independent.
        w3 = self.w.reshape(in_channels, -1, embed_dim)
        shift = self.mean_arr / self.std_arr
        self.b_eff = (self.b
                      - jnp.einsum("c,cpd->d", shift, w3)[None, :]).astype(
                          jnp.float32)
        self._w_cache = collections.OrderedDict()   # bounded per-shape cache

    # Effective weights: 1/std (per channel) always folded in; bilinear resize
    # folded in only for small inputs.  Rows zero-padded to _K_ALIGN.
    def _weights(self, hin, win):
        key = (hin, win)
        if key in self._w_cache:
            self._w_cache.move_to_end(key)
            return self._w_cache[key]
        hout, wout = self.input_shape
        c, d = self.in_channels, self.embed_dim
        w4 = (self.w.reshape(c, hout, wout, d)
              / self.std_arr[:, None, None, None])
        if (hin, win) == (hout, wout):
            w_eff = w4.reshape(c * hout * wout, d)
        else:
            a_h = _interp_matrix(hout, hin)
            a_w = _interp_matrix(wout, win)
            w_eff = jnp.einsum("oh,pw,copd->chwd", a_h, a_w, w4)
            w_eff = w_eff.reshape(c * hin * win, d)
        k = w_eff.shape[0]
        k_pad = ((k + _K_ALIGN - 1) // _K_ALIGN) * _K_ALIGN
        if k_pad != k:
            w_eff = jnp.pad(w_eff, ((0, k_pad - k), (0, 0)))  # zero rows: free
        w_eff = jax.device_put(w_eff.astype(self.compute_dtype))
        self._w_cache[key] = (w_eff, k_pad)
        while len(self._w_cache) > self.max_cached_shapes:
            self._w_cache.popitem(last=False)
        return self._w_cache[key]

    def __call__(self, x, return_logits=False):
        # x: (N, C, H, W), C in {1, 3}
        n, c, hin, win = x.shape
        assert c in (1, 3) and c == self.in_channels
        hout, wout = self.input_shape
        if ((hin, win) != (hout, wout)
                and hin * win > self.fold_factor * hout * wout):
            # Large input: folding the resize into W would multiply K (and MXU
            # FLOPs / VMEM) by (Hin*Win)/(Hout*Wout).  Run the separable
            # bilinear resize as a tiny XLA pre-stage instead and keep the
            # kernel's W small and VMEM-resident.
            a_h = _interp_matrix(hout, hin)
            a_w = _interp_matrix(wout, win)
            x = jnp.einsum("oh,nchw,pw->ncop", a_h, x, a_w)
            hin, win = hout, wout
        w_eff, k_pad = self._weights(hin, win)
        x_flat = x.reshape(n, c * hin * win)
        if x_flat.shape[1] != k_pad:
            x_flat = jnp.pad(x_flat, ((0, 0), (0, k_pad - x_flat.shape[1])))
        x_flat = x_flat.astype(self.compute_dtype)
        return fused_embed_l2norm(x_flat, w_eff, self.b_eff,
                                  return_logits=return_logits)


# ----------------------------------------------------------------------------
# Pure-JAX reference (explicit resize -> preprocess -> linear -> normalize)
# ----------------------------------------------------------------------------
def _reference(model, x, return_logits=False):
    hout, wout = model.input_shape
    if x.shape[2:] != (hout, wout):
        a_h = _interp_matrix(hout, x.shape[2])
        a_w = _interp_matrix(wout, x.shape[3])
        x = jnp.einsum("oh,nchw,pw->ncop", a_h, x, a_w)
    mean = model.mean_arr[None, :, None, None]
    std = model.std_arr[None, :, None, None]
    xn = (x - mean) / std
    y = xn.reshape(x.shape[0], -1) @ model.w + model.b
    if return_logits:
        return y
    nrm = jnp.sqrt(jnp.sum(y * y, axis=1, keepdims=True))
    return y / nrm


if __name__ == "__main__":
    key = jax.random.PRNGKey(0)
    keys = jax.random.split(key, 4)

    model = BaseFaceModelPallas(input_shape=(16, 16), embed_dim=128,
                                mean=0.5, std=0.5, in_channels=3,
                                compute_dtype=jnp.float32)

    # 1) Small input with spatial != input_shape -> resize folded into W_eff.
    x = jax.random.uniform(keys[0], (2, 3, 12, 12), jnp.float32)
    out = jax.block_until_ready(model(x))
    ref = _reference(model, x)
    assert out.shape == (2, 128)
    assert jnp.allclose(out, ref, rtol=1e-3, atol=1e-3), "mismatch vs reference"
    assert jnp.allclose(jnp.linalg.norm(out, axis=1), 1.0, atol=1e-3)

    # Logits path (return_logits=True).
    logits = jax.block_until_ready(model(x, return_logits=True))
    assert jnp.allclose(logits, _reference(model, x, return_logits=True),
                        rtol=1e-3, atol=1e-3)

    # 2) Same-spatial-size path (original skips the interpolate branch).
    x_same = jax.random.uniform(keys[1], (2, 3, 16, 16), jnp.float32)
    assert jnp.allclose(jax.block_until_ready(model(x_same)),
                        _reference(model, x_same), rtol=1e-3, atol=1e-3)

    # 3) Large-input path: separable-resize pre-stage + small-K fused kernel.
    x_big = jax.random.uniform(keys[2], (2, 3, 40, 40), jnp.float32)
    assert jnp.allclose(jax.block_until_ready(model(x_big)),
                        _reference(model, x_big), rtol=1e-3, atol=1e-3)

    # 4) Batch not tile-aligned: partial edge tile + >=2 parallel grid steps.
    x_batch = jax.random.uniform(keys[3], (13, 3, 16, 16), jnp.float32)
    out_b = jax.block_until_ready(model(x_batch))
    assert out_b.shape == (13, 128)
    assert jnp.allclose(out_b, _reference(model, x_batch), rtol=1e-3, atol=1e-3)

    # 5) bf16-operand variant (default on v6e/v7x), loose tolerance.
    model_bf16 = BaseFaceModelPallas(input_shape=(16, 16), embed_dim=128,
                                     mean=0.5, std=0.5, in_channels=3,
                                     compute_dtype=jnp.bfloat16)
    out_bf16 = jax.block_until_ready(model_bf16(x))
    assert jnp.allclose(out_bf16, ref, atol=5e-2)

    # 6) Default (auto compute dtype for this device), sanity check only.
    model_auto = BaseFaceModelPallas(input_shape=(16, 16), embed_dim=128,
                                     mean=0.5, std=0.5, in_channels=3)
    out_auto = jax.block_until_ready(model_auto(x))
    assert jnp.allclose(out_auto, ref, atol=5e-2)

    print("KERNEL_OK")
</pallas_src>

<mosaic_0001>
module attributes {stable_mosaic.version = 11 : i64} {
  func.func @_fused_embed_kernel(%arg0: i32, %arg1: memref<8x512xf32, #tpu.memory_space<vmem>>, %arg2: memref<512x128xf32, #tpu.memory_space<vmem>>, %arg3: memref<1x128xf32, #tpu.memory_space<vmem>>, %arg4: memref<8x128xf32, #tpu.memory_space<vmem>>) attributes {dimension_semantics = [#tpu.dimension_semantics<parallel>], iteration_bounds = array<i64: 1>, scalar_prefetch = 0 : i64, scratch_operands = 0 : i64, tpu.core_type = #tpu.core_type<tc>, window_params = [{transform_indices = @transform_0, window_bounds = array<i64: 8, 512>}, {pipeline_mode = #tpu.pipeline_mode<synchronous>, transform_indices = @transform_1, window_bounds = array<i64: 512, 128>}, {pipeline_mode = #tpu.pipeline_mode<synchronous>, transform_indices = @transform_2, window_bounds = array<i64: 1, 128>}, {transform_indices = @transform_3, window_bounds = array<i64: 8, 128>}]} {
    %c0 = arith.constant 0 : index
    %c0_0 = arith.constant 0 : index
    %0 = vector.load %arg1[%c0, %c0_0] : memref<8x512xf32, #tpu.memory_space<vmem>>, vector<8x512xf32>
    %c0_1 = arith.constant 0 : index
    %c0_2 = arith.constant 0 : index
    %1 = vector.load %arg2[%c0_1, %c0_2] : memref<512x128xf32, #tpu.memory_space<vmem>>, vector<512x128xf32>
    %cst = arith.constant dense<0.000000e+00> : vector<8x128xf32>
    %2 = tpu.matmul %0, %1, %cst {dimension_numbers = #tpu.dot_dimension_numbers<[1], [0], [0], [1], [0, 0, 1, 1], [], []>} : vector<8x512xf32>, vector<512x128xf32>, vector<8x128xf32> -> vector<8x128xf32>
    %c0_3 = arith.constant 0 : index
    %c0_4 = arith.constant 0 : index
    %3 = vector.load %arg3[%c0_3, %c0_4] : memref<1x128xf32, #tpu.memory_space<vmem>>, vector<1x128xf32>
    %4 = vector.broadcast %3 : vector<1x128xf32> to vector<8x128xf32>
    %5 = arith.addf %2, %4 : vector<8x128xf32>
    %6 = arith.mulf %5, %5 : vector<8x128xf32>
    %cst_5 = arith.constant dense<0.000000e+00> : vector<8xf32>
    %7 = vector.multi_reduction <add>, %6, %cst_5 [1] : vector<8x128xf32> to vector<8xf32>
    %8 = vector.shape_cast %7 : vector<8xf32> to vector<8x1xf32>
    %cst_6 = arith.constant 9.99999996E-13 : f32
    %9 = vector.broadcast %cst_6 : f32 to vector<8x1xf32>
    %10 = arith.addf %8, %9 : vector<8x1xf32>
    %11 = math.rsqrt %10 : vector<8x1xf32>
    %12 = vector.broadcast %11 : vector<8x1xf32> to vector<8x128xf32>
    %13 = arith.mulf %5, %12 : vector<8x128xf32>
    %c0_7 = arith.constant 0 : index
    %c0_8 = arith.constant 0 : index
    %14 = vector.load %arg4[%c0_7, %c0_8] : memref<8x128xf32, #tpu.memory_space<vmem>>, vector<8x128xf32>
    tpu.vector_store %arg4[%c0_7, %c0_8], %13 {strides = array<i32>} : memref<8x128xf32, #tpu.memory_space<vmem>>, vector<8x128xf32>,
    return
  }
  func.func @transform_0(%arg0: i32) -> (i32, i32) {
    %c0_i32 = arith.constant 0 : i32
    %c0_i32_0 = arith.constant 0 : i32
    return %arg0, %c0_i32 : i32, i32
  }
  func.func @transform_1(%arg0: i32) -> (i32, i32) {
    %c0_i32 = arith.constant 0 : i32
    %c0_i32_0 = arith.constant 0 : i32
    %c0_i32_1 = arith.constant 0 : i32
    return %c0_i32, %c0_i32_0 : i32, i32
  }
  func.func @transform_2(%arg0: i32) -> (i32, i32) {
    %c0_i32 = arith.constant 0 : i32
    %c0_i32_0 = arith.constant 0 : i32
    %c0_i32_1 = arith.constant 0 : i32
    return %c0_i32, %c0_i32_0 : i32, i32
  }
  func.func @transform_3(%arg0: i32) -> (i32, i32) {
    %c0_i32 = arith.constant 0 : i32
    %c0_i32_0 = arith.constant 0 : i32
    return %arg0, %c0_i32 : i32, i32
  }
}

</mosaic_0001>

<bundles_post_ra>
// kernel: tpu_custom_call.1
= control target key start
LH: loop header
LB: loop body
LE: loop exit
PB: predicated region body
PF: predicated region fallthrough
CT: control target
= control target key end

     0   :  { %8 = vsyncpa [#allocation3], 0  ;;  %s564_s0 = inlined_call_operand.hbm [shape: f32[8,512], index: 0, kind: input, shape index: {}]   ;;  %s565_s1 = inlined_call_operand.hbm [shape: f32[512,128], index: 1, kind: input, shape index: {}]   ;;  %s566_s2 = inlined_call_operand.vmem [shape: f32[1,128], index: 2, kind: input, shape index: {}]   ;;  %s567_s3 = inlined_call_operand.hbm [shape: f32[8,128], index: 3, kind: output, shape index: {}]  }
   0x1   :  { %9 = vsyncpa [#allocation6], 0 }
   0x2   :  { %10 = vsyncpa [#allocation4], 0  ;;  %s493_s12 = smov [#allocation2]   ;;  %s494_s14 = smov [#allocation5]  }
   0x3   :  { %s17_s13 = sshll.u32 %s493_s12, 4  ;;  %s26_s15 = sshll.u32 %s494_s14, 4  ;;  %s18_s13 = int_to_ptr.vmem [resolvable:$true] %s17_s13  ;;  %s518_s15 = int_to_ptr.vmem [resolvable:$true] %s26_s15 }
   0x4   :  { %s421_s18 = scalar_lea.hbm %s564_s0, 512 }
   0x5   :  { %p422_p0 = scmp.ne.s32.totalorder %s564_s0, %s421_s18  ;;  %p425_p1 = scmp.lt.u32.totalorder %s421_s18, %s564_s0 }
   0x7   :  { %p427_p2 = pnand %p425_p1, %p422_p0 }
   0x9   :  { %430 = shalt.err (!%p427_p2)
}
   0xa   :  { %s431_s23 = scalar_lea.vmem %s18_s13, 512  ;;  %p436_p4 = scmp.lt.s32.totalorder %s18_s13, %s18_s13 }
   0xb   :  { %p432_p3 = scmp.ne.s32.totalorder %s18_s13, %s431_s23  ;;  %p437_p5 = scmp.lt.s32.totalorder %s431_s23, %s431_s23 }
   0xd   :  { %p438_p6 = por %p437_p5, %p436_p4 }
   0xf   :  { %p439_p7 = pnand %p438_p6, %p432_p3 }
  0x11   :  { %442 = shalt.err (!%p439_p7)
}
  0x12   :  { %20 = dma.hbm_to_vmem [thread:$0]  %s564_s0, 512, %s18_s13, [#allocation3]  }
  0x13   :  { %s443_s28 = scalar_lea.hbm %s565_s1, 8192 }
  0x14   :  { %p444_p8 = scmp.ne.s32.totalorder %s565_s1, %s443_s28  ;;  %p447_p9 = scmp.lt.u32.totalorder %s443_s28, %s565_s1 }
  0x16   :  { %p449_p10 = pnand %p447_p9, %p444_p8 }
  0x18   :  { %452 = shalt.err (!%p449_p10)
}
  0x19   :  { %s453_s6 = scalar_lea.vmem %s518_s15, 8192  ;;  %p458_p12 = scmp.lt.s32.totalorder %s518_s15, %s518_s15 }
  0x1a   :  { %p454_p11 = scmp.ne.s32.totalorder %s518_s15, %s453_s6  ;;  %p459_p13 = scmp.lt.s32.totalorder %s453_s6, %s453_s6 }
  0x1c   :  { %p460_p0 = por %p459_p13, %p458_p12 }
  0x1e   :  { %p461_p1 = pnand %p460_p0, %p454_p11 }
  0x20   :  { %464 = shalt.err (!%p461_p1)
}
  0x21   :  { %s495_s0 = smov 128   ;;  %s496_s7 = smov 8  }
  0x22   :  { %32 = dma.hbm_to_vmem [thread:$0]  %s565_s1, 8192, %s518_s15, [#allocation6], %s495_s0, %s495_s0, %s496_s7  }
  0x23   :  { %487 = dma.done.wait [#allocation3], 512  }
  0x24   :  { %488 = vsyncadd [#allocation3], 4294966784 }
  0x25   :  { %489 = dma.done.wait [#allocation6], 8192  }
  0x26   :  { %490 = vsyncadd [#allocation6], 4294959104  ;;  %v61_v0 = vld [vmem:[#allocation5 + $0x80] sm:$0xff]  ;;  %v62_v1 = vld [vmem:[#allocation5 + $0x88] sm:$0xff]  ;;  %s497_s11 = smov [#allocation7]  }
  0x27   :  { %v45_v2 = vld [vmem:[#allocation5] sm:$0xff]  ;;  %v350_v3 = vpack.c.bf16 %v62_v1, %v61_v0  ;;  %v46_v4 = vld [vmem:[#allocation5 + $0x8] sm:$0xff]  ;;  %v63_v11 = vld [vmem:[#allocation5 + $0x90] sm:$0xff]  ;;  %s269_s12 = sshll.u32 %s497_s11, 4  ;;  %s270_s12 = int_to_ptr.vmem [resolvable:$true] %s269_s12 }
  0x28   :  { %v93_v5 = vld [vmem:[#allocation5 + $0x180] sm:$0xff]  ;;  %v94_v6 = vld [vmem:[#allocation5 + $0x188] sm:$0xff]  ;;  %v352_v7 = vpack.c.bf16 %v46_v4, %v45_v2  ;;  %v64_v13 = vld [vmem:[#allocation5 + $0x98] sm:$0xff]  ;;  %s465_s13 = scalar_lea.vmem %s270_s12, 128  ;;  %p470_p3 = scmp.lt.s32.totalorder %s270_s12, %s270_s12 }
  0x29   :  { %v382_v8 = vpack.c.bf16 %v94_v6, %v93_v5  ;;  %v77_v9 = vld [vmem:[#allocation5 + $0x100] sm:$0xff]  ;;  %v78_v10 = vld [vmem:[#allocation5 + $0x108] sm:$0xff]  ;;  %351 = vmatprep.subr.bf16.mxu0 %v350_v3  ;;  %v47_v14 = vld [vmem:[#allocation5 + $0x10] sm:$0xff]  ;;  %v354_v16 = vpack.c.bf16 %v64_v13, %v63_v11  ;;  %p466_p2 = scmp.ne.s32.totalorder %s270_s12, %s465_s13  ;;  %p471_p4 = scmp.lt.s32.totalorder %s465_s13, %s465_s13 }
  0x2a   :  { %v384_v12 = vpack.c.bf16 %v78_v10, %v77_v9  ;;  %v48_v15 = vld [vmem:[#allocation5 + $0x18] sm:$0xff]  ;;  %353 = vmatpush3.bf16.msra.mxu0 %v352_v7  ;;  %v95_v18 = vld [vmem:[#allocation5 + $0x190] sm:$0xff]  ;;  %v65_v23 = vld [vmem:[#allocation5 + $0xa0] sm:$0xff] }
  0x2b   :  { %383 = vmatprep.subr.bf16.mxu1 %v382_v8  ;;  %v356_v17 = vpack.c.bf16 %v48_v15, %v47_v14  ;;  %v96_v19 = vld [vmem:[#allocation5 + $0x198] sm:$0xff]  ;;  %v79_v20 = vld [vmem:[#allocation5 + $0x110] sm:$0xff]  ;;  %v66_v24 = vld [vmem:[#allocation5 + $0xa8] sm:$0xff]  ;;  %355 = vmatprep.subr.bf16.mxu0 %v354_v16  ;;  %p472_p5 = por %p471_p4, %p470_p3 }
  0x2c   :  { %385 = vmatpush3.bf16.msra.mxu1 %v384_v12  ;;  %v386_v21 = vpack.c.bf16 %v96_v19, %v95_v18  ;;  %v80_v22 = vld [vmem:[#allocation5 + $0x118] sm:$0xff]  ;;  %v358_v26 = vpack.c.bf16 %v66_v24, %v65_v23  ;;  %v49_v27 = vld [vmem:[#allocation5 + $0x20] sm:$0xff]  ;;  %v50_v28 = vld [vmem:[#allocation5 + $0x28] sm:$0xff] }
  0x2d   :  { %v388_v25 = vpack.c.bf16 %v80_v22, %v79_v20  ;;  %v97_v29 = vld [vmem:[#allocation5 + $0x1a0] sm:$0xff]  ;;  %v98_v30 = vld [vmem:[#allocation5 + $0x1a8] sm:$0xff]  ;;  %v360_v33 = vpack.c.bf16 %v50_v28, %v49_v27  ;;  %v67_v35 = vld [vmem:[#allocation5 + $0xb0] sm:$0xff]  ;;  %p473_p6 = pnand %p472_p5, %p466_p2 }
  0x2e   :  { %387 = vmatprep.subr.bf16.mxu1 %v386_v21  ;;  %v81_v31 = vld [vmem:[#allocation5 + $0x120] sm:$0xff]  ;;  %v82_v32 = vld [vmem:[#allocation5 + $0x128] sm:$0xff]  ;;  %357 = vmatpush3.bf16.msra.mxu0 %v356_v17  ;;  %v390_v34 = vpack.c.bf16 %v98_v30, %v97_v29  ;;  %v68_v36 = vld [vmem:[#allocation5 + $0xb8] sm:$0xff] }
  0x2f   :  { %v51_v37 = vld [vmem:[#allocation5 + $0x30] sm:$0xff]  ;;  %359 = vmatprep.subr.bf16.mxu0 %v358_v26  ;;  %v392_v38 = vpack.c.bf16 %v82_v32, %v81_v31  ;;  %v362_v39 = vpack.c.bf16 %v68_v36, %v67_v35  ;;  %v52_v40 = vld [vmem:[#allocation5 + $0x38] sm:$0xff]  ;;  %v69_v46 = vld [vmem:[#allocation5 + $0xc0] sm:$0xff] }
  0x30   :  { %389 = vmatpush3.bf16.msra.mxu1 %v388_v25  ;;  %v99_v41 = vld [vmem:[#allocation5 + $0x1b0] sm:$0xff]  ;;  %v100_v42 = vld [vmem:[#allocation5 + $0x1b8] sm:$0xff]  ;;  %v70_v47 = vld [vmem:[#allocation5 + $0xc8] sm:$0xff]  ;;  %v364_v48 = vpack.c.bf16 %v52_v40, %v51_v37 }
  0x31   :  { %391 = vmatprep.subr.bf16.mxu1 %v390_v34  ;;  %v394_v43 = vpack.c.bf16 %v100_v42, %v99_v41  ;;  %v83_v44 = vld [vmem:[#allocation5 + $0x130] sm:$0xff]  ;;  %v84_v45 = vld [vmem:[#allocation5 + $0x138] sm:$0xff]  ;;  %v101_v49 = vld [vmem:[#allocation5 + $0x1c0] sm:$0xff]  ;;  %v366_v52 = vpack.c.bf16 %v70_v47, %v69_v46 }
  0x32   :  { %361 = vmatpush3.bf16.msra.mxu0 %v360_v33  ;;  %v102_v50 = vld [vmem:[#allocation5 + $0x1c8] sm:$0xff]  ;;  %v396_v51 = vpack.c.bf16 %v84_v45, %v83_v44  ;;  %v53_v53 = vld [vmem:[#allocation5 + $0x40] sm:$0xff]  ;;  %v71_v58 = vld [vmem:[#allocation5 + $0xd0] sm:$0xff] }
  0x33   :  { %363 = vmatprep.subr.bf16.mxu0 %v362_v39  ;;  %v54_v54 = vld [vmem:[#allocation5 + $0x48] sm:$0xff]  ;;  %v85_v55 = vld [vmem:[#allocation5 + $0x140] sm:$0xff]  ;;  %v398_v56 = vpack.c.bf16 %v102_v50, %v101_v49  ;;  %v72_v59 = vld [vmem:[#allocation5 + $0xd8] sm:$0xff] }
  0x34   :  { %393 = vmatpush3.bf16.msra.mxu1 %v392_v38  ;;  %v86_v57 = vld [vmem:[#allocation5 + $0x148] sm:$0xff]  ;;  %v103_v60 = vld [vmem:[#allocation5 + $0x1d0] sm:$0xff]  ;;  %v104_v61 = vld [vmem:[#allocation5 + $0x1d8] sm:$0xff]  ;;  %v368_v62 = vpack.c.bf16 %v54_v54, %v53_v53  ;;  %v370_v0 = vpack.c.bf16 %v72_v59, %v71_v58 }
  0x35   :  { %395 = vmatprep.subr.bf16.mxu1 %v394_v43  ;;  %v400_v63 = vpack.c.bf16 %v86_v57, %v85_v55  ;;  %v55_v1 = vld [vmem:[#allocation5 + $0x50] sm:$0xff]  ;;  %v56_v2 = vld [vmem:[#allocation5 + $0x58] sm:$0xff]  ;;  %v402_v4 = vpack.c.bf16 %v104_v61, %v103_v60  ;;  %v73_v6 = vld [vmem:[#allocation5 + $0xe0] sm:$0xff] }
  0x36   :  { %365 = vmatpush3.bf16.msra.mxu0 %v364_v48  ;;  %v87_v3 = vld [vmem:[#allocation5 + $0x150] sm:$0xff]  ;;  %v88_v5 = vld [vmem:[#allocation5 + $0x158] sm:$0xff]  ;;  %v74_v7 = vld [vmem:[#allocation5 + $0xe8] sm:$0xff]  ;;  %v372_v10 = vpack.c.bf16 %v56_v2, %v55_v1 }
  0x37   :  { %367 = vmatprep.subr.bf16.mxu0 %v366_v52  ;;  %v105_v8 = vld [vmem:[#allocation5 + $0x1e0] sm:$0xff]  ;;  %v106_v9 = vld [vmem:[#allocation5 + $0x1e8] sm:$0xff]  ;;  %v404_v13 = vpack.c.bf16 %v88_v5, %v87_v3  ;;  %v374_v14 = vpack.c.bf16 %v74_v7, %v73_v6  ;;  %v75_v19 = vld [vmem:[#allocation5 + $0xf0] sm:$0xff] }
  0x38   :  { %397 = vmatpush3.bf16.msra.mxu1 %v396_v51  ;;  %v57_v11 = vld [vmem:[#allocation5 + $0x60] sm:$0xff]  ;;  %v58_v12 = vld [vmem:[#allocation5 + $0x68] sm:$0xff]  ;;  %v406_v18 = vpack.c.bf16 %v106_v9, %v105_v8  ;;  %v76_v20 = vld [vmem:[#allocation5 + $0xf8] sm:$0xff] }
  0x39   :  { %399 = vmatprep.subr.bf16.mxu1 %v398_v56  ;;  %v89_v15 = vld [vmem:[#allocation5 + $0x160] sm:$0xff]  ;;  %v90_v16 = vld [vmem:[#allocation5 + $0x168] sm:$0xff]  ;;  %v44_v21 = vld [vmem:[#allocation2 + $0x18] sm:$0xff]  ;;  %v376_v24 = vpack.c.bf16 %v58_v12, %v57_v11  ;;  %v378_v26 = vpack.c.bf16 %v76_v20, %v75_v19 }
  0x3a   :  { %369 = vmatpush3.bf16.msra.mxu0 %v368_v62  ;;  %v42_v17 = vld [vmem:[#allocation2 + $0x8] sm:$0xff]  ;;  %v107_v22 = vld [vmem:[#allocation5 + $0x1f0] sm:$0xff]  ;;  %v108_v23 = vld [vmem:[#allocation5 + $0x1f8] sm:$0xff]  ;;  %250 = vmatprep.mubr.f32.mxu1 %v44_v21  ;;  %v408_v25 = vpack.c.bf16 %v90_v16, %v89_v15 }
  0x3b   :  { %371 = vmatprep.subr.bf16.mxu0 %v370_v0  ;;  %180 = vmatprep.mubr.f32.mxu0 %v42_v17  ;;  %v59_v27 = vld [vmem:[#allocation5 + $0x70] sm:$0xff]  ;;  %v60_v28 = vld [vmem:[#allocation5 + $0x78] sm:$0xff]  ;;  %v410_v29 = vpack.c.bf16 %v108_v23, %v107_v22  ;;  %v41_v34 = vld [vmem:[#allocation2] sm:$0xff] }
  0x3c   :  { %401 = vmatpush3.bf16.msra.mxu1 %v400_v63  ;;  %v91_v30 = vld [vmem:[#allocation5 + $0x170] sm:$0xff]  ;;  %v92_v31 = vld [vmem:[#allocation5 + $0x178] sm:$0xff]  ;;  %v380_v32 = vpack.c.bf16 %v60_v28, %v59_v27  ;;  %v279_v37 = vld [vmem:[%s566_s2] ss:$0 sm:$0xff] }
  0x3d   :  { %403 = vmatprep.subr.bf16.mxu1 %v402_v4  ;;  %v412_v33 = vpack.c.bf16 %v92_v31, %v91_v30  ;;  %v43_v35 = vld [vmem:[#allocation2 + $0x10] sm:$0xff] }
  0x3e   :  { %373 = vmatpush3.bf16.msra.mxu0 %v372_v10 }
  0x3f   :  { %375 = vmatprep.subr.bf16.mxu0 %v374_v14 }
  0x40   :  { %405 = vmatpush3.bf16.msra.mxu1 %v404_v13 }
  0x41   :  { %407 = vmatprep.subr.bf16.mxu1 %v406_v18 }
  0x42   :  { %377 = vmatpush3.bf16.msra.mxu0 %v376_v24 }
  0x43   :  { %379 = vmatprep.subr.bf16.mxu0 %v378_v26 }
  0x44   :  { %409 = vmatpush3.bf16.msra.mxu1 %v408_v25 }
  0x45   :  { %411 = vmatprep.subr.bf16.mxu1 %v410_v29 }
  0x46   :  { %381 = vmatpush3.bf16.msra.mxu0 %v380_v32 }
  0x48   :  { %413 = vmatpush3.bf16.msra.mxu1 %v412_v33 }
  0x49   :  { %181 = vmatmul.mubr.f32.vlgmr.msra.gmra.mrb[0].mxu0 %v41_v34 }
  0x4b   :  { %251 = vmatmul.mubr.f32.vlgmr.msra.gmra.mrb[0].mxu1 %v43_v35 }
 0x11c   :  { %v312_v36 = vpop.f32.mrb[0].mxu0 }
 0x11d   :  { %v313_v38 = vpop.f32.mrb[1].mxu0 }
 0x11e   :  { %v347_v39 = vpop.f32.mrb[0].mxu1  ;;  %v314_v40 = vadd.f32 %v313_v38, %v312_v36 }
 0x11f   :  { %v348_v41 = vpop.f32.mrb[1].mxu1 }
 0x120   :  { %v349_v42 = vadd.f32 %v348_v41, %v347_v39  ;;  %v183_v43 = vadd.f32 %v314_v40, %v279_v37 }
 0x122   :  { %v253_v44 = vadd.f32 %v349_v42, %v183_v43 }
 0x124   :  { %v256_v45 = vmul.f32 %v253_v44, %v253_v44 }
 0x126   :  { %257 = vadd.xlane.f32.xlu0 %v256_v45 }
 0x1b3   :  { %v258_v46 = vpop.xlane.xlu0 %257 }
 0x1b4   :  { %v259_v47 = vadd.f32 1e-12, %v258_v46 }
 0x1b6   :  { %419 = vrsqrt.f32 %v259_v47 }
 0x1c0   :  { %v420_v48 = vpop.eup %419 }
 0x1c1   :  { %v261_v49 = vmul.f32 %v420_v48, %v253_v44 }
 0x1c3   :  { %262 = vst [vmem:[#allocation7] sm:$0xff] %v261_v49 }
 0x1c4   :  { %476 = shalt.err (!%p473_p6)
}
 0x1c5   :  { %s477_s15 = scalar_lea.hbm %s567_s3, 128 }
 0x1c6   :  { %p478_p7 = scmp.ne.s32.totalorder %s567_s3, %s477_s15  ;;  %p481_p8 = scmp.lt.u32.totalorder %s477_s15, %s567_s3 }
 0x1c8   :  { %p483_p9 = pnand %p481_p8, %p478_p7 }
 0x1ca   :  { %486 = shalt.err (!%p483_p9)
}
 0x1cb   :  { %272 = dma.vmem_to_hbm [thread:$0]  %s270_s12, 128, %s567_s3, [#allocation4]  }
 0x1cc   :  { %491 = dma.done.wait [#allocation4], 128  }
 0x1cd   :  { %492 = vsyncadd [#allocation4], 4294967168 }
 0x1ce   :  { %276 = vsyncpa [#allocation3], 1 }
 0x1cf   :  { %277 = vsyncpa [#allocation6], 1 }
 0x1d0   :  { %278 = vsyncpa [#allocation4], 1 }

</bundles_post_ra>
